<compile_context>
chip_gen: v5e
topology: v5e:2x2
jax: 0.10.0
libtpu: 0.0.40
codegen_flags: <defaults>
</compile_context>

<pallas_src>
import functools

import jax
import jax.numpy as jnp
from jax import lax
from jax.experimental import pallas as pl
from jax.experimental.pallas import tpu as pltpu


def _multask_ce_kernel(l0_ref, l1_ref, l2_ref, l3_ref, labels_ref, out_ref,
                       *, n_true):
    """One batch tile: partial sum over rows of the 4 per-task NLLs."""
    tn, c = l0_ref.shape
    row0 = pl.program_id(0) * tn

    # Row-validity mask for the (possibly ragged) last tile.
    row_ids = lax.broadcasted_iota(jnp.int32, (tn, 1), 0) + row0      # (TN, 1)
    valid = row_ids < n_true

    col_ids = lax.broadcasted_iota(jnp.int32, (tn, c), 1)             # (TN, C)

    nll = jnp.zeros((tn, 1), jnp.float32)
    for t, lref in enumerate((l0_ref, l1_ref, l2_ref, l3_ref)):
        logits = lref[...]                        # native dtype (bf16 stays bf16)
        lab = labels_ref[:, t:t + 1]              # (TN, 1) int32, static lane slice
        # Row max in the native dtype (exact; bf16 packs 2 elems/lane on v6e+).
        m = jnp.max(logits, axis=-1, keepdims=True)
        # f32 only where precision matters: shifted logits feeding exp / log.
        x = logits.astype(jnp.float32) - m.astype(jnp.float32)        # (TN, C) f32
        se = jnp.sum(jnp.exp(x), axis=-1, keepdims=True)
        # One-hot gather reuses x; the row max cancels:
        #   nll = (m + log(se)) - (m + x[label]) = log(se) - x[label]
        onehot = col_ids == lab
        x_lab = jnp.sum(jnp.where(onehot, x, 0.0), axis=-1, keepdims=True)
        nll = nll + (jnp.log(se) - x_lab)

    # True select (not arithmetic masking): padded rows may carry garbage.
    nll = jnp.where(valid, nll, 0.0)
    partial = jnp.sum(nll, axis=0, keepdims=True)                     # (1, 1)
    # Lane-dense (1, 128) partial-sum row for this block (unmasked vst).
    out_ref[...] = jnp.broadcast_to(partial, out_ref.shape)


def _round_up(x, m):
    return ((x + m - 1) // m) * m


def _plan_tiles(n, c, itemsize):
    """Pick (TN, vmem_limit_bytes) from the device's actual VMEM capacity."""
    try:
        vmem_cap = int(pltpu.get_tpu_info().vmem_capacity_bytes)
    except Exception:
        vmem_cap = 64 * 1024 * 1024          # safe floor for every generation
    # Leave headroom below physical: ~48 MiB on v7x (64 MiB), ~96 MiB on v5e/v6e.
    vmem_limit = max(32 << 20, min(vmem_cap * 3 // 4, vmem_cap - (8 << 20)))

    c_pad = _round_up(max(c, 1), 128)        # lane padding of the VMEM tiles
    per_row = (4 * 2 * c_pad * itemsize      # 4 logit tiles, double-buffered
               + 2 * 128 * 4                 # lane-padded (TN, 4) i32 label tile x2
               + 5 * c_pad * 4)              # live f32/i32 temps (x, exp, iota, mask)
    budget = int(vmem_limit * 0.6)           # margin for internal scratch / spills

    if n <= 8:
        return n, int(vmem_limit)            # toy sizes: block == full batch
    tn = (budget // per_row) // 8 * 8
    tn = min(tn, 8192)                       # diminishing returns past this
    tn = min(tn, _round_up(pl.cdiv(n, 2), 8))  # >= 2 blocks: both TCs get work
    tn = max(tn, 8)
    return int(tn), int(vmem_limit)


def multask_loss(outputs, labels):
    """outputs: list of 4 arrays, each (N, C); labels: (N, 4) int.

    Returns scalar f32 = sum_t mean_n CE(outputs[t], labels[:, t]).
    """
    assert len(outputs) == 4
    n, c = outputs[0].shape
    tn, vmem_limit = _plan_tiles(n, c, jnp.dtype(outputs[0].dtype).itemsize)
    n_blocks = pl.cdiv(n, tn)

    labels_k = labels.astype(jnp.int32)      # (N, 4): one lane-padded tile/buffer

    logit_spec = pl.BlockSpec((tn, c), lambda i: (i, 0))
    partials = pl.pallas_call(
        functools.partial(_multask_ce_kernel, n_true=n),
        out_shape=jax.ShapeDtypeStruct((n_blocks, 128), jnp.float32),
        grid_spec=pltpu.PrefetchScalarGridSpec(
            num_scalar_prefetch=0,
            grid=(n_blocks,),
            in_specs=[logit_spec, logit_spec, logit_spec, logit_spec,
                      pl.BlockSpec((tn, 4), lambda i: (i, 0))],
            out_specs=pl.BlockSpec((1, 128), lambda i: (i, 0)),
        ),
        compiler_params=pltpu.CompilerParams(
            dimension_semantics=("parallel",),
            vmem_limit_bytes=vmem_limit),
    )(outputs[0], outputs[1], outputs[2], outputs[3], labels_k)

    # Each block wrote its partial sum broadcast across 128 lanes; take lane 0.
    return jnp.sum(partials[:, 0]) / jnp.float32(n)


def _reference(outputs, labels):
    total = jnp.float32(0.0)
    for t, o in enumerate(outputs):
        logp = jax.nn.log_softmax(o.astype(jnp.float32), axis=-1)
        nll = -jnp.take_along_axis(logp, labels[:, t][:, None], axis=-1)[:, 0]
        total = total + jnp.mean(nll)
    return total


if __name__ == "__main__":
    T = 4
    root = jax.random.PRNGKey(0)
    k1, k2 = jax.random.split(root)

    # Case 1: toy f32 heads (single block).
    N, C = 8, 16
    keys = jax.random.split(k1, T + 1)
    outputs = [jax.random.normal(keys[t], (N, C), dtype=jnp.float32)
               for t in range(T)]
    labels = jax.random.randint(keys[T], (N, T), 0, C, dtype=jnp.int32)
    loss = multask_loss(outputs, labels)
    jax.block_until_ready(loss)
    ref = _reference(outputs, labels)
    assert jnp.allclose(loss, ref, rtol=1e-5, atol=1e-5), (loss, ref)

    # Case 2: bf16 logits + ragged batch (native-dtype DMA, 2 blocks,
    # last-tile masking, in-kernel label lane slice).
    N2, C2 = 20, 24
    keys2 = jax.random.split(k2, T + 1)
    outputs2 = [jax.random.normal(keys2[t], (N2, C2), dtype=jnp.bfloat16)
                for t in range(T)]
    labels2 = jax.random.randint(keys2[T], (N2, T), 0, C2, dtype=jnp.int32)
    loss2 = multask_loss(outputs2, labels2)
    jax.block_until_ready(loss2)
    ref2 = _reference(outputs2, labels2)
    assert jnp.allclose(loss2, ref2, rtol=1e-4, atol=1e-4), (loss2, ref2)

    print("KERNEL_OK")
</pallas_src>

<mosaic_0001>
module attributes {stable_mosaic.version = 11 : i64} {
  func.func @_multask_ce_kernel(%arg0: i32, %arg1: memref<8x16xf32, #tpu.memory_space<vmem>>, %arg2: memref<8x16xf32, #tpu.memory_space<vmem>>, %arg3: memref<8x16xf32, #tpu.memory_space<vmem>>, %arg4: memref<8x16xf32, #tpu.memory_space<vmem>>, %arg5: memref<8x4xi32, #tpu.memory_space<vmem>>, %arg6: memref<1x128xf32, #tpu.memory_space<vmem>>) attributes {dimension_semantics = [#tpu.dimension_semantics<parallel>], iteration_bounds = array<i64: 1>, scalar_prefetch = 0 : i64, scratch_operands = 0 : i64, tpu.core_type = #tpu.core_type<tc>, window_params = [{transform_indices = @transform_0, window_bounds = array<i64: 8, 16>}, {transform_indices = @transform_1, window_bounds = array<i64: 8, 16>}, {transform_indices = @transform_2, window_bounds = array<i64: 8, 16>}, {transform_indices = @transform_3, window_bounds = array<i64: 8, 16>}, {transform_indices = @transform_4, window_bounds = array<i64: 8, 4>}, {transform_indices = @transform_5, window_bounds = array<i64: 1, 128>}]} {
    %c8_i32 = arith.constant 8 : i32
    %0 = arith.muli %arg0, %c8_i32 : i32
    %1 = tpu.iota {dimensions = array<i32: 0>} : vector<8x1xi32>
    %2 = vector.broadcast %0 : i32 to vector<8x1xi32>
    %3 = arith.addi %1, %2 : vector<8x1xi32>
    %c8_i32_0 = arith.constant 8 : i32
    %4 = vector.broadcast %c8_i32_0 : i32 to vector<8x1xi32>
    %5 = arith.cmpi slt, %3, %4 : vector<8x1xi32>
    %6 = tpu.iota {dimensions = array<i32: 1>} : vector<8x16xi32>
    %cst = arith.constant 0.000000e+00 : f32
    %7 = vector.broadcast %cst : f32 to vector<8x1xf32>
    %c0 = arith.constant 0 : index
    %c0_1 = arith.constant 0 : index
    %8 = vector.load %arg1[%c0, %c0_1] : memref<8x16xf32, #tpu.memory_space<vmem>>, vector<8x16xf32>
    %c0_2 = arith.constant 0 : index
    %c0_3 = arith.constant 0 : index
    %9 = vector.load %arg5[%c0_2, %c0_3] : memref<8x4xi32, #tpu.memory_space<vmem>>, vector<8x1xi32>
    %cst_4 = arith.constant dense<0xFF800000> : vector<8xf32>
    %10 = vector.multi_reduction <maximumf>, %8, %cst_4 [1] : vector<8x16xf32> to vector<8xf32>
    %11 = vector.shape_cast %10 : vector<8xf32> to vector<8x1xf32>
    %12 = vector.broadcast %11 : vector<8x1xf32> to vector<8x16xf32>
    %13 = arith.subf %8, %12 : vector<8x16xf32>
    %14 = math.exp %13 : vector<8x16xf32>
    %cst_5 = arith.constant dense<0.000000e+00> : vector<8xf32>
    %15 = vector.multi_reduction <add>, %14, %cst_5 [1] : vector<8x16xf32> to vector<8xf32>
    %16 = vector.shape_cast %15 : vector<8xf32> to vector<8x1xf32>
    %17 = vector.broadcast %9 : vector<8x1xi32> to vector<8x16xi32>
    %18 = arith.cmpi eq, %6, %17 : vector<8x16xi32>
    %cst_6 = arith.constant 0.000000e+00 : f32
    %19 = vector.broadcast %cst_6 : f32 to vector<8x16xf32>
    %20 = arith.select %18, %13, %19 : vector<8x16xi1>, vector<8x16xf32>
    %cst_7 = arith.constant dense<0.000000e+00> : vector<8xf32>
    %21 = vector.multi_reduction <add>, %20, %cst_7 [1] : vector<8x16xf32> to vector<8xf32>
    %22 = vector.shape_cast %21 : vector<8xf32> to vector<8x1xf32>
    %23 = math.log %16 : vector<8x1xf32>
    %24 = arith.subf %23, %22 : vector<8x1xf32>
    %25 = arith.addf %7, %24 : vector<8x1xf32>
    %c0_8 = arith.constant 0 : index
    %c0_9 = arith.constant 0 : index
    %26 = vector.load %arg2[%c0_8, %c0_9] : memref<8x16xf32, #tpu.memory_space<vmem>>, vector<8x16xf32>
    %c0_10 = arith.constant 0 : index
    %c1 = arith.constant 1 : index
    %27 = vector.load %arg5[%c0_10, %c1] : memref<8x4xi32, #tpu.memory_space<vmem>>, vector<8x1xi32>
    %cst_11 = arith.constant dense<0xFF800000> : vector<8xf32>
    %28 = vector.multi_reduction <maximumf>, %26, %cst_11 [1] : vector<8x16xf32> to vector<8xf32>
    %29 = vector.shape_cast %28 : vector<8xf32> to vector<8x1xf32>
    %30 = vector.broadcast %29 : vector<8x1xf32> to vector<8x16xf32>
    %31 = arith.subf %26, %30 : vector<8x16xf32>
    %32 = math.exp %31 : vector<8x16xf32>
    %cst_12 = arith.constant dense<0.000000e+00> : vector<8xf32>
    %33 = vector.multi_reduction <add>, %32, %cst_12 [1] : vector<8x16xf32> to vector<8xf32>
    %34 = vector.shape_cast %33 : vector<8xf32> to vector<8x1xf32>
    %35 = vector.broadcast %27 : vector<8x1xi32> to vector<8x16xi32>
    %36 = arith.cmpi eq, %6, %35 : vector<8x16xi32>
    %cst_13 = arith.constant 0.000000e+00 : f32
    %37 = vector.broadcast %cst_13 : f32 to vector<8x16xf32>
    %38 = arith.select %36, %31, %37 : vector<8x16xi1>, vector<8x16xf32>
    %cst_14 = arith.constant dense<0.000000e+00> : vector<8xf32>
    %39 = vector.multi_reduction <add>, %38, %cst_14 [1] : vector<8x16xf32> to vector<8xf32>
    %40 = vector.shape_cast %39 : vector<8xf32> to vector<8x1xf32>
    %41 = math.log %34 : vector<8x1xf32>
    %42 = arith.subf %41, %40 : vector<8x1xf32>
    %43 = arith.addf %25, %42 : vector<8x1xf32>
    %c0_15 = arith.constant 0 : index
    %c0_16 = arith.constant 0 : index
    %44 = vector.load %arg3[%c0_15, %c0_16] : memref<8x16xf32, #tpu.memory_space<vmem>>, vector<8x16xf32>
    %c0_17 = arith.constant 0 : index
    %c2 = arith.constant 2 : index
    %45 = vector.load %arg5[%c0_17, %c2] : memref<8x4xi32, #tpu.memory_space<vmem>>, vector<8x1xi32>
    %cst_18 = arith.constant dense<0xFF800000> : vector<8xf32>
    %46 = vector.multi_reduction <maximumf>, %44, %cst_18 [1] : vector<8x16xf32> to vector<8xf32>
    %47 = vector.shape_cast %46 : vector<8xf32> to vector<8x1xf32>
    %48 = vector.broadcast %47 : vector<8x1xf32> to vector<8x16xf32>
    %49 = arith.subf %44, %48 : vector<8x16xf32>
    %50 = math.exp %49 : vector<8x16xf32>
    %cst_19 = arith.constant dense<0.000000e+00> : vector<8xf32>
    %51 = vector.multi_reduction <add>, %50, %cst_19 [1] : vector<8x16xf32> to vector<8xf32>
    %52 = vector.shape_cast %51 : vector<8xf32> to vector<8x1xf32>
    %53 = vector.broadcast %45 : vector<8x1xi32> to vector<8x16xi32>
    %54 = arith.cmpi eq, %6, %53 : vector<8x16xi32>
    %cst_20 = arith.constant 0.000000e+00 : f32
    %55 = vector.broadcast %cst_20 : f32 to vector<8x16xf32>
    %56 = arith.select %54, %49, %55 : vector<8x16xi1>, vector<8x16xf32>
    %cst_21 = arith.constant dense<0.000000e+00> : vector<8xf32>
    %57 = vector.multi_reduction <add>, %56, %cst_21 [1] : vector<8x16xf32> to vector<8xf32>
    %58 = vector.shape_cast %57 : vector<8xf32> to vector<8x1xf32>
    %59 = math.log %52 : vector<8x1xf32>
    %60 = arith.subf %59, %58 : vector<8x1xf32>
    %61 = arith.addf %43, %60 : vector<8x1xf32>
    %c0_22 = arith.constant 0 : index
    %c0_23 = arith.constant 0 : index
    %62 = vector.load %arg4[%c0_22, %c0_23] : memref<8x16xf32, #tpu.memory_space<vmem>>, vector<8x16xf32>
    %c0_24 = arith.constant 0 : index
    %c3 = arith.constant 3 : index
    %63 = vector.load %arg5[%c0_24, %c3] : memref<8x4xi32, #tpu.memory_space<vmem>>, vector<8x1xi32>
    %cst_25 = arith.constant dense<0xFF800000> : vector<8xf32>
    %64 = vector.multi_reduction <maximumf>, %62, %cst_25 [1] : vector<8x16xf32> to vector<8xf32>
    %65 = vector.shape_cast %64 : vector<8xf32> to vector<8x1xf32>
    %66 = vector.broadcast %65 : vector<8x1xf32> to vector<8x16xf32>
    %67 = arith.subf %62, %66 : vector<8x16xf32>
    %68 = math.exp %67 : vector<8x16xf32>
    %cst_26 = arith.constant dense<0.000000e+00> : vector<8xf32>
    %69 = vector.multi_reduction <add>, %68, %cst_26 [1] : vector<8x16xf32> to vector<8xf32>
    %70 = vector.shape_cast %69 : vector<8xf32> to vector<8x1xf32>
    %71 = vector.broadcast %63 : vector<8x1xi32> to vector<8x16xi32>
    %72 = arith.cmpi eq, %6, %71 : vector<8x16xi32>
    %cst_27 = arith.constant 0.000000e+00 : f32
    %73 = vector.broadcast %cst_27 : f32 to vector<8x16xf32>
    %74 = arith.select %72, %67, %73 : vector<8x16xi1>, vector<8x16xf32>
    %cst_28 = arith.constant dense<0.000000e+00> : vector<8xf32>
    %75 = vector.multi_reduction <add>, %74, %cst_28 [1] : vector<8x16xf32> to vector<8xf32>
    %76 = vector.shape_cast %75 : vector<8xf32> to vector<8x1xf32>
    %77 = math.log %70 : vector<8x1xf32>
    %78 = arith.subf %77, %76 : vector<8x1xf32>
    %79 = arith.addf %61, %78 : vector<8x1xf32>
    %cst_29 = arith.constant 0.000000e+00 : f32
    %80 = vector.broadcast %cst_29 : f32 to vector<8x1xf32>
    %81 = arith.select %5, %79, %80 : vector<8x1xi1>, vector<8x1xf32>
    %cst_30 = arith.constant dense<0.000000e+00> : vector<1xf32>
    %82 = vector.multi_reduction <add>, %81, %cst_30 [0] : vector<8x1xf32> to vector<1xf32>
    %83 = vector.shape_cast %82 : vector<1xf32> to vector<1x1xf32>
    %84 = vector.shape_cast %83 : vector<1x1xf32> to vector<1x1xf32>
    %85 = vector.broadcast %84 : vector<1x1xf32> to vector<1x128xf32>
    %c0_31 = arith.constant 0 : index
    %c0_32 = arith.constant 0 : index
    %86 = vector.load %arg6[%c0_31, %c0_32] : memref<1x128xf32, #tpu.memory_space<vmem>>, vector<1x128xf32>
    tpu.vector_store %arg6[%c0_31, %c0_32], %85 {strides = array<i32>} : memref<1x128xf32, #tpu.memory_space<vmem>>, vector<1x128xf32>,
    return
  }
  func.func @transform_0(%arg0: i32) -> (i32, i32) {
    %c0_i32 = arith.constant 0 : i32
    %c0_i32_0 = arith.constant 0 : i32
    return %arg0, %c0_i32 : i32, i32
  }
  func.func @transform_1(%arg0: i32) -> (i32, i32) {
    %c0_i32 = arith.constant 0 : i32
    %c0_i32_0 = arith.constant 0 : i32
    return %arg0, %c0_i32 : i32, i32
  }
  func.func @transform_2(%arg0: i32) -> (i32, i32) {
    %c0_i32 = arith.constant 0 : i32
    %c0_i32_0 = arith.constant 0 : i32
    return %arg0, %c0_i32 : i32, i32
  }
  func.func @transform_3(%arg0: i32) -> (i32, i32) {
    %c0_i32 = arith.constant 0 : i32
    %c0_i32_0 = arith.constant 0 : i32
    return %arg0, %c0_i32 : i32, i32
  }
  func.func @transform_4(%arg0: i32) -> (i32, i32) {
    %c0_i32 = arith.constant 0 : i32
    %c0_i32_0 = arith.constant 0 : i32
    return %arg0, %c0_i32 : i32, i32
  }
  func.func @transform_5(%arg0: i32) -> (i32, i32) {
    %c0_i32 = arith.constant 0 : i32
    %c0_i32_0 = arith.constant 0 : i32
    return %arg0, %c0_i32 : i32, i32
  }
}

</mosaic_0001>

<bundles_post_ra>
// kernel: tpu_custom_call.1
= control target key start
LH: loop header
LB: loop body
LE: loop exit
PB: predicated region body
PF: predicated region fallthrough
CT: control target
= control target key end

     0   :  { %10 = vsyncpa [#allocation3], 0  ;;  %s385_s0 = inlined_call_operand.vmem [shape: f32[8,16], index: 0, kind: input, shape index: {}]   ;;  %s386_s1 = inlined_call_operand.hbm [shape: f32[8,16], index: 1, kind: input, shape index: {}]   ;;  %s387_s2 = inlined_call_operand.hbm [shape: f32[8,16], index: 2, kind: input, shape index: {}]   ;;  %s388_s3 = inlined_call_operand.hbm [shape: f32[8,16], index: 3, kind: input, shape index: {}]   ;;  %s389_s4 = inlined_call_operand.vmem [shape: s32[8,4], index: 4, kind: input, shape index: {}]   ;;  %s390_s5 = inlined_call_operand.hbm [shape: f32[1,128], index: 5, kind: output, shape index: {}]  }
   0x1   :  { %11 = vsyncpa [#allocation6], 0  ;;  %s31_s20 = sshll.u32 %s387_s2, 4  ;;  %s32_s20 = int_to_ptr.hbm [resolvable:$true] %s31_s20 }
   0x2   :  { %12 = vsyncpa [#allocation4], 0  ;;  %s317_s21 = smov [#allocation5]   ;;  %s20_s25 = sshll.u32 %s386_s1, 4  ;;  %s21_s25 = int_to_ptr.hbm [resolvable:$true] %s20_s25 }
   0x3   :  { %s33_s22 = sshll.u32 %s317_s21, 4  ;;  %s318_s26 = smov [#allocation2]   ;;  %s34_s22 = int_to_ptr.vmem [resolvable:$true] %s33_s22 }
   0x4   :  { %36 = dma.hbm_to_vmem [thread:$0]  %s32_s20, 128, %s34_s22, [#allocation6]  }
   0x5   :  { %s22_s27 = sshll.u32 %s318_s26, 4  ;;  %s42_s30 = sshll.u32 %s388_s3, 4  ;;  %s23_s27 = int_to_ptr.vmem [resolvable:$true] %s22_s27  ;;  %s43_s30 = int_to_ptr.hbm [resolvable:$true] %s42_s30 }
   0x6   :  { %25 = dma.hbm_to_vmem [thread:$0]  %s21_s25, 128, %s23_s27, [#allocation3]  }
   0x7   :  { %s319_s2 = smov [#allocation7]  }
   0x8   :  { %s44_s6 = sshll.u32 %s319_s2, 4  ;;  %s45_s6 = int_to_ptr.vmem [resolvable:$true] %s44_s6 }
   0x9   :  { %47 = dma.hbm_to_vmem [thread:$0]  %s43_s30, 128, %s45_s6, [#allocation6]  }
   0xa   :  { %311 = dma.done.wait [#allocation3], 128  }
   0xb   :  { %312 = vsyncadd [#allocation3], 4294967168 }
   0xc   :  { %313 = dma.done.wait [#allocation6], 256  }
   0xd   :  { %314 = vsyncadd [#allocation6], 4294967040  ;;  %v320_v0 = vmov 0   ;;  %vm72_vm0 = vcmask 130048   ;;  %v71_v1 = vld [vmem:[%s389_s4] sm:$0xff]  ;;  %v116_v2 = vld [vmem:[#allocation5] sm:$0xff]  ;;  %v68_v19 = vlaneseq }
   0xe   :  { %194 = vset.pattern.permute.xlu1 %v320_v0  ;;  %v70_v3 = vld [vmem:[%s385_s0] sm:$0xff]  ;;  %v117_v4 = vsel %vm72_vm0, %v116_v2, -inf  ;;  %v138_v6 = vld [vmem:[#allocation7] sm:$0xff]  ;;  %v321_v8 = vmov 1   ;;  %v322_v9 = vmov 2   ;;  %v323_v10 = vmov 3  }
   0xf   :  { %83 = vperm.xlu1 %194, %v71_v1   ;;  %v73_v5 = vsel %vm72_vm0, %v70_v3, -inf  ;;  %118 = vmax.xlane.f32.xlu2 %v117_v4  ;;  %v139_v7 = vsel %vm72_vm0, %v138_v6, -inf  ;;  %v94_v11 = vld [vmem:[#allocation2] sm:$0xff]  ;;  %v69_v25 = vand.u32 127, %v68_v19  ;;  %s324_s0 = smov [#allocation8]   ;;  %s175_s11 = sshll.u32 %s390_s5, 4  ;;  %s176_s11 = int_to_ptr.hbm [resolvable:$true] %s175_s11 }
  0x10   :  { %74 = vmax.xlane.f32.xlu0 %v73_v5  ;;  %196 = vset.pattern.permute.xlu2 %v322_v9  ;;  %v95_v12 = vsel %vm72_vm0, %v94_v11, -inf  ;;  %s173_s4 = sshll.u32 %s324_s0, 4  ;;  %s174_s4 = int_to_ptr.vmem [resolvable:$true] %s173_s4 }
  0x11   :  { %195 = vset.pattern.permute.xlu0 %v321_v8 }
  0x17   :  { %140 = vmax.xlane.f32.xlu2 %v139_v7 }
  0x24   :  { %105 = vperm.xlu0 %195, %v71_v1  }
  0x2c   :  { %198 = vset.pattern.permute.xlu0 %v323_v10 }
  0x2f   :  { %127 = vperm.xlu2 %196, %v71_v1  }
  0x37   :  { %197 = vset.pattern.permute.xlu2 %v323_v10 }
  0x38   :  { %149 = vperm.xlu2 %197, %v71_v1  }
  0x39   :  { %96 = vmax.xlane.f32.xlu1 %v95_v12 }
  0x81   :  { %v84_v27 = vpop.permute.xlu1 %83 }
  0x82   :  { %v119_v13 = vpop.xlane.xlu2 %118  ;;  %vm85_vm1 = vcmp.eq.s32.totalorder %v69_v25, %v84_v27 }
  0x83   :  { %v75_v14 = vpop.xlane.xlu0 %74  ;;  %v120_v15 = vsub.f32 %v116_v2, %v119_v13 }
  0x84   :  { %v76_v16 = vsub.f32 %v70_v3, %v75_v14 }
  0x85   :  { %v121_v17 = vmul.f32 1.442695, %v120_v15 }
  0x86   :  { %v77_v18 = vmul.f32 1.442695, %v76_v16  ;;  %v86_v29 = vsel %vm85_vm1, %v76_v16, 0.0 }
  0x87   :  { %199 = vpow2.f32 %v121_v17  ;;  %v87_v31 = vsel %vm72_vm0, %v86_v29, 0.0 }
  0x88   :  { %201 = vpow2.f32 %v77_v18 }
  0x8a   :  { %v141_v20 = vpop.xlane.xlu2 %140 }
  0x8b   :  { %v142_v21 = vsub.f32 %v138_v6, %v141_v20 }
  0x8d   :  { %v200_v22 = vpop.eup %199  ;;  %v143_v23 = vmul.f32 1.442695, %v142_v21 }
  0x8e   :  { %v202_v24 = vpop.eup %201  ;;  %v123_v26 = vsel %vm72_vm0, %v200_v22, 0.0 }
  0x8f   :  { %124 = vadd.xlane.f32.xlu1 %v123_v26  ;;  %v79_v28 = vsel %vm72_vm0, %v202_v24, 0.0  ;;  %203 = vpow2.f32 %v143_v23 }
  0x90   :  { %80 = vadd.xlane.f32.xlu0 %v79_v28 }
  0x92   :  { %v128_v36 = vpop.permute.xlu2 %127 }
  0x93   :  { %vm129_vm3 = vcmp.eq.s32.totalorder %v69_v25, %v128_v36 }
  0x94   :  { %v130_v40 = vsel %vm129_vm3, %v120_v15, 0.0 }
  0x95   :  { %v204_v30 = vpop.eup %203  ;;  %v131_v44 = vsel %vm72_vm0, %v130_v40, 0.0 }
  0x96   :  { %v145_v32 = vsel %vm72_vm0, %v204_v30, 0.0  ;;  %v106_v33 = vpop.permute.xlu0 %105 }
  0x97   :  { %88 = vadd.xlane.f32.xlu1 %v87_v31  ;;  %vm107_vm2 = vcmp.eq.s32.totalorder %v69_v25, %v106_v33 }
  0x98   :  { %146 = vadd.xlane.f32.xlu0 %v145_v32 }
  0x9a   :  { %v150_v42 = vpop.permute.xlu2 %149 }
  0x9b   :  { %vm151_vm4 = vcmp.eq.s32.totalorder %v69_v25, %v150_v42 }
  0x9c   :  { %v152_v45 = vsel %vm151_vm4, %v142_v21, 0.0 }
  0x9d   :  { %v153_v46 = vsel %vm72_vm0, %v152_v45, 0.0 }
  0xac   :  { %v97_v34 = vpop.xlane.xlu1 %96 }
  0xad   :  { %v98_v35 = vsub.f32 %v94_v11, %v97_v34 }
  0xaf   :  { %v99_v37 = vmul.f32 1.442695, %v98_v35  ;;  %v108_v38 = vsel %vm107_vm2, %v98_v35, 0.0 }
  0xb0   :  { %v109_v39 = vsel %vm72_vm0, %v108_v38, 0.0 }
  0xb1   :  { %205 = vpow2.f32 %v99_v37  ;;  %110 = vadd.xlane.f32.xlu1 %v109_v39 }
  0xb7   :  { %v206_v41 = vpop.eup %205 }
  0xb8   :  { %v101_v43 = vsel %vm72_vm0, %v206_v41, 0.0 }
  0xb9   :  { %102 = vadd.xlane.f32.xlu2 %v101_v43  ;;  %132 = vadd.xlane.f32.xlu1 %v131_v44 }
  0xc1   :  { %154 = vadd.xlane.f32.xlu1 %v153_v46 }
 0x102   :  { %v125_v47 = vpop.xlane.xlu1 %124 }
 0x103   :  { %v81_v49 = vpop.xlane.xlu0 %80 }
 0x104   :  { %207 = vlog2.f32 %v81_v49 }
 0x105   :  { %209 = vlog2.f32 %v125_v47 }
 0x10a   :  { %v89_v48 = vpop.xlane.xlu1 %88  ;;  %v208_v54 = vpop.eup %207 }
 0x10b   :  { %v147_v51 = vpop.xlane.xlu0 %146  ;;  %v210_v55 = vpop.eup %209  ;;  %v91_v57 = vmul.f32 0.6931472, %v208_v54 }
 0x10c   :  { %211 = vlog2.f32 %v147_v51  ;;  %v135_v60 = vmul.f32 0.6931472, %v210_v55 }
 0x10d   :  { %v92_v61 = vsub.f32 %v91_v57, %v89_v48 }
 0x112   :  { %v212_v56 = vpop.eup %211 }
 0x113   :  { %v157_v62 = vmul.f32 0.6931472, %v212_v56 }
 0x124   :  { %v111_v50 = vpop.xlane.xlu1 %110 }
 0x12c   :  { %v103_v52 = vpop.xlane.xlu2 %102  ;;  %v133_v53 = vpop.xlane.xlu1 %132 }
 0x12d   :  { %213 = vlog2.f32 %v103_v52  ;;  %v136_v2 = vsub.f32 %v135_v60, %v133_v53 }
 0x133   :  { %v214_v58 = vpop.eup %213 }
 0x134   :  { %v113_v59 = vmul.f32 0.6931472, %v214_v58  ;;  %v155_v0 = vpop.xlane.xlu1 %154 }
 0x135   :  { %v158_v4 = vsub.f32 %v157_v62, %v155_v0 }
 0x136   :  { %v114_v63 = vsub.f32 %v113_v59, %v111_v50 }
 0x138   :  { %v115_v1 = vadd.f32 %v114_v63, %v92_v61 }
 0x13a   :  { %v137_v3 = vadd.f32 %v136_v2, %v115_v1 }
 0x13c   :  { %v159_v5 = vadd.f32 %v158_v4, %v137_v3 }
 0x13e   :  { %v161_v6 = vrot.slane %v159_v5, 4 }
 0x140   :  { %v162_v7 = vadd.f32 %v161_v6, %v159_v5 }
 0x142   :  { %v163_v8 = vrot.slane %v162_v7, 2 }
 0x144   :  { %v164_v9 = vadd.f32 %v163_v8, %v162_v7 }
 0x146   :  { %v165_v10 = vrot.slane %v164_v9, 1 }
 0x148   :  { %v166_v11 = vadd.f32 %v165_v10, %v164_v9 }
 0x14a   :  { %167 = vst [vmem:[#allocation8] sm:$0x1] %v166_v11 }
 0x14b   :  { %178 = dma.vmem_to_hbm [thread:$0]  %s174_s4, 16, %s176_s11, [#allocation4]  }
 0x14c   :  { %315 = dma.done.wait [#allocation4], 16  }
 0x14d   :  { %316 = vsyncadd [#allocation4], 4294967280 }
 0x14e   :  { %183 = vsyncpa [#allocation3], 1 }
 0x14f   :  { %184 = vsyncpa [#allocation6], 1 }
 0x150   :  { %185 = vsyncpa [#allocation4], 1 }

</bundles_post_ra>
